<compile_context>
chip_gen: v6e
topology: v6e:2x2x1
jax: 0.10.0
libtpu: 0.0.40
codegen_flags: <defaults>
</compile_context>

<pallas_src>
import functools

import jax
import jax.numpy as jnp
from jax.experimental import pallas as pl
from jax.experimental.pallas import tpu as pltpu


# ----------------------------------------------------------------------------
# Fused Res2 kernel
# ----------------------------------------------------------------------------

def _res2_fused_kernel(x_ref, mask_ref, w1_ref, b1_ref, g1_ref, be1_ref,
                       w2_ref, b2_ref, g2_ref, be2_ref, o_ref, *,
                       k, wp, mq, pad_off, m_valid, eps, roll_sign):
    """conv1 -> BN1(train stats) -> ReLU -> conv2 -> BN2, all VMEM-resident.

    Layout: channels on sublanes, flattened zero-padded spatial (n, i, j) on
    lanes.  A conv tap (di, dj) reads column c + di*Wp + dj, implemented as a
    circular lane roll; wrapped-in garbage only lands in columns that are
    masked out of the BN statistics and discarded by the wrapper.
    """
    x = x_ref[...]            # (C_in, Mq)
    mask = mask_ref[...]      # (1,  Mq)  1.0 at valid output columns

    def shifted(a, w):
        # returns r with r[:, c] == a[:, (c + w) % mq]
        s = (roll_sign * w) % mq
        return a if s == 0 else pltpu.roll(a, shift=s, axis=1)

    # ---- conv1: accumulate k*k taps of  W1[t] @ roll(x, tap offset) -------
    c_mid = w1_ref.shape[1]
    y1 = jnp.zeros((c_mid, mq), jnp.float32)
    for t in range(k * k):
        t_off = (t // k) * wp + (t % k)
        y1 = y1 + jnp.dot(w1_ref[t], shifted(x, t_off),
                          preferred_element_type=jnp.float32)
    y1 = y1 + b1_ref[...]

    # ---- BN1 (training-mode batch stats over valid columns) + ReLU --------
    mean1 = jnp.sum(y1 * mask, axis=1, keepdims=True) / m_valid
    c1 = y1 - mean1
    var1 = jnp.sum(c1 * c1 * mask, axis=1, keepdims=True) / m_valid
    scale1 = g1_ref[...] * jax.lax.rsqrt(var1 + eps)
    # masking re-creates the zero padding ring needed by conv2
    h = jnp.maximum(c1 * scale1 + be1_ref[...], 0.0) * mask

    # ---- conv2 on the implicitly zero-padded intermediate ------------------
    c_out = w2_ref.shape[1]
    y2 = jnp.zeros((c_out, mq), jnp.float32)
    for t in range(k * k):
        t_off = (t // k) * wp + (t % k)
        y2 = y2 + jnp.dot(w2_ref[t], shifted(h, t_off - pad_off),
                          preferred_element_type=jnp.float32)
    y2 = y2 + b2_ref[...]

    # ---- BN2 (no ReLU) ------------------------------------------------------
    mean2 = jnp.sum(y2 * mask, axis=1, keepdims=True) / m_valid
    c2 = y2 - mean2
    var2 = jnp.sum(c2 * c2 * mask, axis=1, keepdims=True) / m_valid
    scale2 = g2_ref[...] * jax.lax.rsqrt(var2 + eps)
    o_ref[...] = (c2 * scale2 + be2_ref[...]).astype(o_ref.dtype)


# ----------------------------------------------------------------------------
# One-time calibration of pltpu.roll's shift direction
# ----------------------------------------------------------------------------

def _roll_probe_kernel(x_ref, o_ref):
    o_ref[...] = pltpu.roll(x_ref[...], shift=1, axis=1)


def detect_roll_sign():
    """Returns s so that pltpu.roll(a, (s*w) % n, 1)[:, c] == a[:, (c+w) % n]."""
    x = jnp.tile(jnp.arange(128, dtype=jnp.float32)[None, :], (8, 1))
    out = pl.pallas_call(
        _roll_probe_kernel,
        out_shape=jax.ShapeDtypeStruct((8, 128), jnp.float32),
    )(x)
    first = int(jax.device_get(out)[0, 0])
    if first == 127:   # jnp.roll convention: out[i] = x[(i - shift) % n]
        return -1
    if first == 1:     # opposite convention: out[i] = x[(i + shift) % n]
        return 1
    raise RuntimeError(f"unexpected pltpu.roll semantics (probe saw {first})")


# ----------------------------------------------------------------------------
# Wrapper
# ----------------------------------------------------------------------------

def res2_forward(x_nchw, params, *, kernel_size, padding, roll_sign):
    k, p = kernel_size, padding
    if k - 1 != 2 * p:
        # TODO(synk): general (non-'same') padding needs a two-call variant
        # with wrapper-side re-padding between the stages.
        raise NotImplementedError("fused Res2 kernel assumes 2*padding == kernel_size - 1")

    w1, b1, g1, be1 = params["w1"], params["b1"], params["gamma1"], params["beta1"]
    w2, b2, g2, be2 = params["w2"], params["b2"], params["gamma2"], params["beta2"]
    c_mid, c_in, _, _ = w1.shape
    c_out = w2.shape[0]
    N, C, H, W = x_nchw.shape
    assert C == c_in

    Hp, Wp = H + 2 * p, W + 2 * p
    Mp = N * Hp * Wp
    Mq = ((Mp + 127) // 128) * 128            # lane-pad -> full-lane stores

    # channels on sublanes, flattened zero-padded spatial (n, i, j) on lanes
    xp = jnp.pad(x_nchw.astype(jnp.float32), ((0, 0), (0, 0), (p, p), (p, p)))
    xT = jnp.transpose(xp, (1, 0, 2, 3)).reshape(c_in, Mp)
    xT = jnp.pad(xT, ((0, 0), (0, Mq - Mp)))                  # (C_in, Mq)

    # valid output columns: (n, i, j) with i < H and j < W on the padded grid
    mask = jnp.pad(jnp.ones((N, H, W), jnp.float32),
                   ((0, 0), (0, 2 * p), (0, 2 * p))).reshape(1, Mp)
    mask = jnp.pad(mask, ((0, 0), (0, Mq - Mp)))              # (1, Mq)

    # per-tap weight matrices, tap index t = di * k + dj
    w1_taps = jnp.transpose(w1, (2, 3, 0, 1)).reshape(k * k, c_mid, c_in)
    w2_taps = jnp.transpose(w2, (2, 3, 0, 1)).reshape(k * k, c_out, c_mid)

    kernel = functools.partial(
        _res2_fused_kernel, k=k, wp=Wp, mq=Mq, pad_off=p * Wp + p,
        m_valid=float(N * H * W), eps=1e-5, roll_sign=roll_sign)

    out_t = pl.pallas_call(
        kernel,
        out_shape=jax.ShapeDtypeStruct((c_out, Mq), jnp.float32),
    )(xT, mask, w1_taps,
      b1.reshape(c_mid, 1), g1.reshape(c_mid, 1), be1.reshape(c_mid, 1),
      w2_taps,
      b2.reshape(c_out, 1), g2.reshape(c_out, 1), be2.reshape(c_out, 1))

    out = out_t[:, :Mp].reshape(c_out, N, Hp, Wp)[:, :, :H, :W]
    return jnp.transpose(out, (1, 0, 2, 3))                   # back to NCHW


# ----------------------------------------------------------------------------
# Parameters + demo
# ----------------------------------------------------------------------------

def init_params(key, in_channels, inter_channels, kernel_size):
    k = kernel_size
    ks = jax.random.split(key, 8)

    def conv_w(rng, c_out, c_in):
        bound = 1.0 / (c_in * k * k) ** 0.5
        return jax.random.uniform(rng, (c_out, c_in, k, k), jnp.float32,
                                  -bound, bound)

    return {
        "w1": conv_w(ks[0], inter_channels, in_channels),
        "b1": 0.1 * jax.random.normal(ks[1], (inter_channels,), jnp.float32),
        "gamma1": 1.0 + 0.1 * jax.random.normal(ks[2], (inter_channels,), jnp.float32),
        "beta1": 0.1 * jax.random.normal(ks[3], (inter_channels,), jnp.float32),
        "w2": conv_w(ks[4], in_channels, inter_channels),
        "b2": 0.1 * jax.random.normal(ks[5], (in_channels,), jnp.float32),
        "gamma2": 1.0 + 0.1 * jax.random.normal(ks[6], (in_channels,), jnp.float32),
        "beta2": 0.1 * jax.random.normal(ks[7], (in_channels,), jnp.float32),
    }


if __name__ == "__main__":
    # Res2(in_channels=8, inter_channels=32, kernel_size=3, padding=1)
    in_channels = 8
    inter_channels = 32
    kernel_size = 3
    padding = 1

    key = jax.random.PRNGKey(0)
    k_param, k_x = jax.random.split(key)
    params = init_params(k_param, in_channels, inter_channels, kernel_size)

    # NCHW input (PyTorch convention): batch=2, C=8, H=W=16
    x = jax.random.normal(k_x, (2, in_channels, 16, 16), jnp.float32)

    roll_sign = detect_roll_sign()   # one-time, outside the forward path

    fwd = jax.jit(functools.partial(res2_forward, kernel_size=kernel_size,
                                    padding=padding, roll_sign=roll_sign))
    out = jax.block_until_ready(fwd(x, params))

    assert out.shape == x.shape, out.shape
    assert bool(jnp.isfinite(out).all())
    print("KERNEL_OK")
</pallas_src>

<mosaic_0001>
module attributes {stable_mosaic.version = 11 : i64} {
  func.func @_roll_probe_kernel(%arg0: memref<8x128xf32, #tpu.memory_space<vmem>>, %arg1: memref<8x128xf32, #tpu.memory_space<vmem>>) attributes {dimension_semantics = [], scalar_prefetch = 0 : i64, scratch_operands = 0 : i64, tpu.core_type = #tpu.core_type<tc>} {
    %c0 = arith.constant 0 : index
    %c0_0 = arith.constant 0 : index
    %0 = vector.load %arg0[%c0, %c0_0] : memref<8x128xf32, #tpu.memory_space<vmem>>, vector<8x128xf32>
    %c1_i32 = arith.constant 1 : i32
    %1 = tpu.dynamic_rotate %0 by %c1_i32 dim 1 : vector<8x128xf32>, i32 -> vector<8x128xf32>
    %c0_1 = arith.constant 0 : index
    %c0_2 = arith.constant 0 : index
    %2 = vector.load %arg1[%c0_1, %c0_2] : memref<8x128xf32, #tpu.memory_space<vmem>>, vector<8x128xf32>
    tpu.vector_store %arg1[%c0_1, %c0_2], %1 {strides = array<i32>} : memref<8x128xf32, #tpu.memory_space<vmem>>, vector<8x128xf32>,
    return
  }
}

</mosaic_0001>

<bundles_post_ra>
// kernel: tpu_custom_call.1
= control target key start
LH: loop header
LB: loop body
LE: loop exit
PB: predicated region body
PF: predicated region fallthrough
CT: control target
= control target key end

     0   :  { %6 = vsyncpa [#allocation3], 0  ;;  %s106_s0 = inlined_call_operand.hbm [shape: f32[8,128], index: 0, kind: input, shape index: {}]   ;;  %s107_s1 = inlined_call_operand.hbm [shape: f32[8,128], index: 1, kind: output, shape index: {}]  }
   0x1   :  { %7 = vsyncpa [#allocation4], 0  ;;  %s87_s6 = smov [#allocation2]  }
   0x2   :  { %s14_s7 = sshll.u32 %s87_s6, 4  ;;  %s15_s7 = int_to_ptr.vmem [resolvable:$true] %s14_s7 }
   0x3   :  { %s51_s8 = scalar_lea.vmem %s15_s7, 128  ;;  %p56_p1 = scmp.lt.s32.totalorder %s15_s7, %s15_s7 }
   0x4   :  { %p52_p0 = scmp.ne.s32.totalorder %s15_s7, %s51_s8  ;;  %p57_p2 = scmp.lt.s32.totalorder %s51_s8, %s51_s8 }
   0x6   :  { %p58_p3 = por %p57_p2, %p56_p1 }
   0x8   :  { %p59_p4 = pnand %p58_p3, %p52_p0 }
   0xa   :  { %62 = shalt.err (!%p59_p4)
}
   0xb   :  { %17 = dma.hbm_to_vmem [thread:$0]  %s106_s0, 128, %s15_s7, [#allocation3]  }
   0xc   :  { %83 = dma.done.wait [#allocation3], 128  }
   0xd   :  { %84 = vsyncadd [#allocation3], 4294967168  ;;  %v21_v0 = vld [vmem:[#allocation2] sm:$0xff]  ;;  %s88_s11 = smov 1   ;;  %s89_s12 = smov [#allocation5]  }
   0xe   :  { %22 = vrot.lane.b32.xlu0 %v21_v0, %s88_s11  ;;  %s31_s13 = sshll.u32 %s89_s12, 4  ;;  %s32_s13 = int_to_ptr.vmem [resolvable:$true] %s31_s13 }
   0xf   :  { %s63_s14 = scalar_lea.vmem %s32_s13, 128  ;;  %p68_p6 = scmp.lt.s32.totalorder %s32_s13, %s32_s13 }
  0x10   :  { %p64_p5 = scmp.ne.s32.totalorder %s32_s13, %s63_s14  ;;  %p69_p7 = scmp.lt.s32.totalorder %s63_s14, %s63_s14 }
  0x12   :  { %p70_p8 = por %p69_p7, %p68_p6 }
  0x14   :  { %p71_p9 = pnand %p70_p8, %p64_p5 }
  0x80   :  { %v23_v1 = vpop.permute.xlu0 %22 }
  0x81   :  { %24 = vst [vmem:[#allocation5] sm:$0xff] %v23_v1 }
  0x82   :  { %74 = shalt.err (!%p71_p9)
}
  0x83   :  { %34 = dma.vmem_to_hbm [thread:$0]  %s32_s13, 128, %s107_s1, [#allocation4]  }
  0x84   :  { %85 = dma.done.wait [#allocation4], 128  }
  0x85   :  { %86 = vsyncadd [#allocation4], 4294967168 }
  0x86   :  { %38 = vsyncpa [#allocation3], 1 }
  0x87   :  { %39 = vsyncpa [#allocation4], 1 }

</bundles_post_ra>
